<compile_context>
chip_gen: v7x
topology: tpu7x:2x2x1
jax: 0.10.0
libtpu: 0.0.40
codegen_flags: <defaults>
</compile_context>

<pallas_src>
import math

import jax
import jax.numpy as jnp
import numpy as np
from jax.experimental import pallas as pl
from jax.experimental.pallas import tpu as pltpu  # noqa: F401  (TPU backend)

# ---- model hyper-params (small, consistent with the module) ----------------
B = 2          # batch
S = 8          # seq_len
D = 32         # d_model
H = 4          # nhead
DK = D // H    # head dim
F = 64         # dim_feedforward
EPS = 1e-5     # LayerNorm eps (PyTorch default)


def encoder_layer_kernel(x_ref,
                         wqkv_ref, bqkv_ref,
                         wo_ref, bo_ref,
                         w1_ref, b1_ref, w2_ref, b2_ref,
                         g1_ref, beta1_ref, g2_ref, beta2_ref,
                         o_ref):
    # Whole problem in one step: flatten batch into rows so every dense layer
    # and LayerNorm runs with M = B*S = 16 rows.
    x = x_ref[...].reshape(B * S, D)                                 # (16, 32)

    # ---- fused Q/K/V projection (single MXU push) ---------------------------
    qkv = jnp.dot(x, wqkv_ref[...],
                  preferred_element_type=jnp.float32) + bqkv_ref[...]  # (16, 3D)

    q = qkv[:, 0 * D:1 * D].reshape(B, S, D)                         # (B, S, D)
    k = qkv[:, 1 * D:2 * D].reshape(B, S, D)
    v = qkv[:, 2 * D:3 * D].reshape(B, S, D)

    wo = wo_ref[...]                                                 # (D, D)
    inv_sqrt_dk = 1.0 / math.sqrt(DK)

    # Static loop over heads; each iteration is batched over B via dot_general
    # (einsum), contracting the last axis directly — no explicit transpose.
    # The head output is folded straight into the output projection, so no
    # lane-wise concatenation of heads is needed.
    attn_out = jnp.zeros((B * S, D), jnp.float32)
    for h in range(H):
        lo, hi = h * DK, (h + 1) * DK
        qh = q[:, :, lo:hi]                                          # (B, S, DK)
        kh = k[:, :, lo:hi]
        vh = v[:, :, lo:hi]
        scores = jnp.einsum("bqd,bkd->bqk", qh, kh,
                            preferred_element_type=jnp.float32) * inv_sqrt_dk
        m = jnp.max(scores, axis=-1, keepdims=True)
        e = jnp.exp(scores - m)
        denom = jnp.sum(e, axis=-1, keepdims=True)
        p = e * pl.reciprocal(denom, approx=False)                   # exact softmax
        ctx = jnp.einsum("bqk,bkd->bqd", p, vh,
                         preferred_element_type=jnp.float32)         # (B, S, DK)
        attn_out = attn_out + jnp.dot(ctx.reshape(B * S, DK), wo[lo:hi, :],
                                      preferred_element_type=jnp.float32)
    attn_out = attn_out + bo_ref[...]

    # ---- residual + LayerNorm 1 (dropout1 == identity) -----------------------
    src = x + attn_out
    mu = jnp.mean(src, axis=-1, keepdims=True)
    var = jnp.mean((src - mu) * (src - mu), axis=-1, keepdims=True)
    src = (src - mu) * jax.lax.rsqrt(var + EPS) * g1_ref[...] + beta1_ref[...]

    # ---- FeedForward (dropout == identity) -----------------------------------
    hdn = jnp.dot(src, w1_ref[...],
                  preferred_element_type=jnp.float32) + b1_ref[...]
    hdn = jnp.maximum(hdn, 0.0)                                      # ReLU
    ff = jnp.dot(hdn, w2_ref[...],
                 preferred_element_type=jnp.float32) + b2_ref[...]

    # ---- residual + LayerNorm 2 (dropout2 == identity) -----------------------
    src = src + ff
    mu = jnp.mean(src, axis=-1, keepdims=True)
    var = jnp.mean((src - mu) * (src - mu), axis=-1, keepdims=True)
    src = (src - mu) * jax.lax.rsqrt(var + EPS) * g2_ref[...] + beta2_ref[...]

    o_ref[...] = src.reshape(B, S, D).astype(o_ref.dtype)


def encoder_layer(x, params):
    """x: (B, S, D) f32.  params: dict of weights in (in, out) layout."""
    # Fuse Q/K/V weights & biases once in the wrapper: (D, 3D) and (1, 3D).
    wqkv = jnp.concatenate([params["wq"], params["wk"], params["wv"]], axis=1)
    bqkv = jnp.concatenate([params["bq"], params["bk"], params["bv"]], axis=1)

    # Single-step kernel: all operands fit comfortably in VMEM, so whole-array
    # (no-grid) blocks are used — no per-step pipeline bookkeeping.
    return pl.pallas_call(
        encoder_layer_kernel,
        out_shape=jax.ShapeDtypeStruct((B, S, D), jnp.float32),
    )(x, wqkv, bqkv,
      params["wo"], params["bo"],
      params["w1"], params["b1"], params["w2"], params["b2"],
      params["g1"], params["beta1"], params["g2"], params["beta2"])


# ---- pure-JAX reference (mirrors the PyTorch forward, eval mode) ------------
def reference(x, p):
    def layernorm(v, g, b):
        mu = jnp.mean(v, axis=-1, keepdims=True)
        var = jnp.mean((v - mu) ** 2, axis=-1, keepdims=True)
        return (v - mu) / jnp.sqrt(var + EPS) * g + b

    q = x @ p["wq"] + p["bq"]
    k = x @ p["wk"] + p["bk"]
    v = x @ p["wv"] + p["bv"]
    q = q.reshape(B, S, H, DK).transpose(0, 2, 1, 3)
    k = k.reshape(B, S, H, DK).transpose(0, 2, 1, 3)
    v = v.reshape(B, S, H, DK).transpose(0, 2, 1, 3)
    scores = jnp.einsum("bhqd,bhkd->bhqk", q, k) / math.sqrt(DK)
    attn = jax.nn.softmax(scores, axis=-1)
    ctx = jnp.einsum("bhqk,bhkd->bhqd", attn, v)
    ctx = ctx.transpose(0, 2, 1, 3).reshape(B, S, D)
    attn_out = ctx @ p["wo"] + p["bo"]
    src = layernorm(x + attn_out, p["g1"], p["beta1"])
    ff = jnp.maximum(src @ p["w1"] + p["b1"], 0.0) @ p["w2"] + p["b2"]
    return layernorm(src + ff, p["g2"], p["beta2"])


def init_params(key):
    ks = jax.random.split(key, 12)

    def lin(k, fan_in, fan_out):
        bound = 1.0 / math.sqrt(fan_in)
        kw, kb = jax.random.split(k)
        w = jax.random.uniform(kw, (fan_in, fan_out), jnp.float32, -bound, bound)
        b = jax.random.uniform(kb, (1, fan_out), jnp.float32, -bound, bound)
        return w, b

    p = {}
    p["wq"], p["bq"] = lin(ks[0], D, D)
    p["wk"], p["bk"] = lin(ks[1], D, D)
    p["wv"], p["bv"] = lin(ks[2], D, D)
    p["wo"], p["bo"] = lin(ks[3], D, D)
    p["w1"], p["b1"] = lin(ks[4], D, F)
    p["w2"], p["b2"] = lin(ks[5], F, D)
    p["g1"] = jnp.ones((1, D), jnp.float32)
    p["beta1"] = jnp.zeros((1, D), jnp.float32)
    p["g2"] = jnp.ones((1, D), jnp.float32)
    p["beta2"] = jnp.zeros((1, D), jnp.float32)
    return p


if __name__ == "__main__":
    key = jax.random.PRNGKey(0)
    kx, kp = jax.random.split(key)
    x = jax.random.normal(kx, (B, S, D), jnp.float32)
    params = init_params(kp)

    out = encoder_layer(x, params)
    out = jax.block_until_ready(out)

    ref = reference(x, params)
    np.testing.assert_allclose(np.asarray(out), np.asarray(ref),
                               atol=1e-4, rtol=1e-4)
    print("KERNEL_OK")
</pallas_src>

<mosaic_0001>
module attributes {stable_mosaic.version = 11 : i64} {
  func.func @encoder_layer_kernel(%arg0: memref<2x8x32xf32, #tpu.memory_space<vmem>>, %arg1: memref<32x96xf32, #tpu.memory_space<vmem>>, %arg2: memref<1x96xf32, #tpu.memory_space<vmem>>, %arg3: memref<32x32xf32, #tpu.memory_space<vmem>>, %arg4: memref<1x32xf32, #tpu.memory_space<vmem>>, %arg5: memref<32x64xf32, #tpu.memory_space<vmem>>, %arg6: memref<1x64xf32, #tpu.memory_space<vmem>>, %arg7: memref<64x32xf32, #tpu.memory_space<vmem>>, %arg8: memref<1x32xf32, #tpu.memory_space<vmem>>, %arg9: memref<1x32xf32, #tpu.memory_space<vmem>>, %arg10: memref<1x32xf32, #tpu.memory_space<vmem>>, %arg11: memref<1x32xf32, #tpu.memory_space<vmem>>, %arg12: memref<1x32xf32, #tpu.memory_space<vmem>>, %arg13: memref<2x8x32xf32, #tpu.memory_space<vmem>>) attributes {dimension_semantics = [], scalar_prefetch = 0 : i64, scratch_operands = 0 : i64, tpu.core_type = #tpu.core_type<tc>} {
    %c0 = arith.constant 0 : index
    %c0_0 = arith.constant 0 : index
    %c0_1 = arith.constant 0 : index
    %0 = vector.load %arg0[%c0, %c0_0, %c0_1] : memref<2x8x32xf32, #tpu.memory_space<vmem>>, vector<2x8x32xf32>
    %1 = vector.shape_cast %0 : vector<2x8x32xf32> to vector<16x32xf32>
    %c0_2 = arith.constant 0 : index
    %c0_3 = arith.constant 0 : index
    %2 = vector.load %arg1[%c0_2, %c0_3] : memref<32x96xf32, #tpu.memory_space<vmem>>, vector<32x96xf32>
    %cst = arith.constant dense<0.000000e+00> : vector<16x96xf32>
    %3 = tpu.matmul %1, %2, %cst {dimension_numbers = #tpu.dot_dimension_numbers<[1], [0], [0], [1], [0, 0, 1, 1], [], []>} : vector<16x32xf32>, vector<32x96xf32>, vector<16x96xf32> -> vector<16x96xf32>
    %c0_4 = arith.constant 0 : index
    %c0_5 = arith.constant 0 : index
    %4 = vector.load %arg2[%c0_4, %c0_5] : memref<1x96xf32, #tpu.memory_space<vmem>>, vector<1x96xf32>
    %5 = vector.broadcast %4 : vector<1x96xf32> to vector<16x96xf32>
    %6 = arith.addf %3, %5 : vector<16x96xf32>
    %7 = vector.extract_strided_slice %6 {offsets = [0, 0], sizes = [16, 32], strides = [1, 1]} : vector<16x96xf32> to vector<16x32xf32>
    %8 = vector.shape_cast %7 : vector<16x32xf32> to vector<2x8x32xf32>
    %9 = vector.extract_strided_slice %6 {offsets = [0, 32], sizes = [16, 32], strides = [1, 1]} : vector<16x96xf32> to vector<16x32xf32>
    %10 = vector.shape_cast %9 : vector<16x32xf32> to vector<2x8x32xf32>
    %11 = vector.extract_strided_slice %6 {offsets = [0, 64], sizes = [16, 32], strides = [1, 1]} : vector<16x96xf32> to vector<16x32xf32>
    %12 = vector.shape_cast %11 : vector<16x32xf32> to vector<2x8x32xf32>
    %c0_6 = arith.constant 0 : index
    %c0_7 = arith.constant 0 : index
    %13 = vector.load %arg3[%c0_6, %c0_7] : memref<32x32xf32, #tpu.memory_space<vmem>>, vector<32x32xf32>
    %cst_8 = arith.constant 0.000000e+00 : f32
    %14 = vector.broadcast %cst_8 : f32 to vector<16x32xf32>
    %15 = vector.extract_strided_slice %8 {offsets = [0, 0, 0], sizes = [2, 8, 8], strides = [1, 1, 1]} : vector<2x8x32xf32> to vector<2x8x8xf32>
    %16 = vector.extract_strided_slice %10 {offsets = [0, 0, 0], sizes = [2, 8, 8], strides = [1, 1, 1]} : vector<2x8x32xf32> to vector<2x8x8xf32>
    %17 = vector.extract_strided_slice %12 {offsets = [0, 0, 0], sizes = [2, 8, 8], strides = [1, 1, 1]} : vector<2x8x32xf32> to vector<2x8x8xf32>
    "tpu.trace_start"() <{level = 10 : i32, message = "bqd,bkd->bqk"}> : () -> ()
    %cst_9 = arith.constant dense<0.000000e+00> : vector<2x8x8xf32>
    %18 = tpu.matmul %15, %16, %cst_9 {dimension_numbers = #tpu.dot_dimension_numbers<[2], [2], [1], [1], [0, 0, 0, 1, 1, 1], [0], [0]>} : vector<2x8x8xf32>, vector<2x8x8xf32>, vector<2x8x8xf32> -> vector<2x8x8xf32>
    "tpu.trace_stop"() : () -> ()
    %cst_10 = arith.constant 0.353553385 : f32
    %19 = vector.broadcast %cst_10 : f32 to vector<2x8x8xf32>
    %20 = arith.mulf %18, %19 : vector<2x8x8xf32>
    %cst_11 = arith.constant dense<0xFF800000> : vector<2x8xf32>
    %21 = vector.multi_reduction <maximumf>, %20, %cst_11 [2] : vector<2x8x8xf32> to vector<2x8xf32>
    %22 = vector.shape_cast %21 : vector<2x8xf32> to vector<2x8x1xf32>
    %23 = vector.broadcast %22 : vector<2x8x1xf32> to vector<2x8x8xf32>
    %24 = arith.subf %20, %23 : vector<2x8x8xf32>
    %25 = math.exp %24 : vector<2x8x8xf32>
    %cst_12 = arith.constant dense<0.000000e+00> : vector<2x8xf32>
    %26 = vector.multi_reduction <add>, %25, %cst_12 [2] : vector<2x8x8xf32> to vector<2x8xf32>
    %27 = vector.shape_cast %26 : vector<2x8xf32> to vector<2x8x1xf32>
    %28 = tpu.reciprocal %27 : vector<2x8x1xf32> -> vector<2x8x1xf32>
    %29 = vector.broadcast %28 : vector<2x8x1xf32> to vector<2x8x8xf32>
    %30 = arith.mulf %25, %29 : vector<2x8x8xf32>
    "tpu.trace_start"() <{level = 10 : i32, message = "bqk,bkd->bqd"}> : () -> ()
    %cst_13 = arith.constant dense<0.000000e+00> : vector<2x8x8xf32>
    %31 = tpu.matmul %30, %17, %cst_13 {dimension_numbers = #tpu.dot_dimension_numbers<[2], [1], [1], [2], [0, 0, 0, 1, 1, 2], [0], [0]>} : vector<2x8x8xf32>, vector<2x8x8xf32>, vector<2x8x8xf32> -> vector<2x8x8xf32>
    "tpu.trace_stop"() : () -> ()
    %32 = vector.shape_cast %31 : vector<2x8x8xf32> to vector<16x8xf32>
    %33 = vector.extract_strided_slice %13 {offsets = [0, 0], sizes = [8, 32], strides = [1, 1]} : vector<32x32xf32> to vector<8x32xf32>
    %cst_14 = arith.constant dense<0.000000e+00> : vector<16x32xf32>
    %34 = tpu.matmul %32, %33, %cst_14 {dimension_numbers = #tpu.dot_dimension_numbers<[1], [0], [0], [1], [0, 0, 1, 1], [], []>} : vector<16x8xf32>, vector<8x32xf32>, vector<16x32xf32> -> vector<16x32xf32>
    %35 = arith.addf %14, %34 : vector<16x32xf32>
    %36 = vector.extract_strided_slice %8 {offsets = [0, 0, 8], sizes = [2, 8, 8], strides = [1, 1, 1]} : vector<2x8x32xf32> to vector<2x8x8xf32>
    %37 = vector.extract_strided_slice %10 {offsets = [0, 0, 8], sizes = [2, 8, 8], strides = [1, 1, 1]} : vector<2x8x32xf32> to vector<2x8x8xf32>
    %38 = vector.extract_strided_slice %12 {offsets = [0, 0, 8], sizes = [2, 8, 8], strides = [1, 1, 1]} : vector<2x8x32xf32> to vector<2x8x8xf32>
    "tpu.trace_start"() <{level = 10 : i32, message = "bqd,bkd->bqk"}> : () -> ()
    %cst_15 = arith.constant dense<0.000000e+00> : vector<2x8x8xf32>
    %39 = tpu.matmul %36, %37, %cst_15 {dimension_numbers = #tpu.dot_dimension_numbers<[2], [2], [1], [1], [0, 0, 0, 1, 1, 1], [0], [0]>} : vector<2x8x8xf32>, vector<2x8x8xf32>, vector<2x8x8xf32> -> vector<2x8x8xf32>
    "tpu.trace_stop"() : () -> ()
    %cst_16 = arith.constant 0.353553385 : f32
    %40 = vector.broadcast %cst_16 : f32 to vector<2x8x8xf32>
    %41 = arith.mulf %39, %40 : vector<2x8x8xf32>
    %cst_17 = arith.constant dense<0xFF800000> : vector<2x8xf32>
    %42 = vector.multi_reduction <maximumf>, %41, %cst_17 [2] : vector<2x8x8xf32> to vector<2x8xf32>
    %43 = vector.shape_cast %42 : vector<2x8xf32> to vector<2x8x1xf32>
    %44 = vector.broadcast %43 : vector<2x8x1xf32> to vector<2x8x8xf32>
    %45 = arith.subf %41, %44 : vector<2x8x8xf32>
    %46 = math.exp %45 : vector<2x8x8xf32>
    %cst_18 = arith.constant dense<0.000000e+00> : vector<2x8xf32>
    %47 = vector.multi_reduction <add>, %46, %cst_18 [2] : vector<2x8x8xf32> to vector<2x8xf32>
    %48 = vector.shape_cast %47 : vector<2x8xf32> to vector<2x8x1xf32>
    %49 = tpu.reciprocal %48 : vector<2x8x1xf32> -> vector<2x8x1xf32>
    %50 = vector.broadcast %49 : vector<2x8x1xf32> to vector<2x8x8xf32>
    %51 = arith.mulf %46, %50 : vector<2x8x8xf32>
    "tpu.trace_start"() <{level = 10 : i32, message = "bqk,bkd->bqd"}> : () -> ()
    %cst_19 = arith.constant dense<0.000000e+00> : vector<2x8x8xf32>
    %52 = tpu.matmul %51, %38, %cst_19 {dimension_numbers = #tpu.dot_dimension_numbers<[2], [1], [1], [2], [0, 0, 0, 1, 1, 2], [0], [0]>} : vector<2x8x8xf32>, vector<2x8x8xf32>, vector<2x8x8xf32> -> vector<2x8x8xf32>
    "tpu.trace_stop"() : () -> ()
    %53 = vector.shape_cast %52 : vector<2x8x8xf32> to vector<16x8xf32>
    %54 = vector.extract_strided_slice %13 {offsets = [8, 0], sizes = [8, 32], strides = [1, 1]} : vector<32x32xf32> to vector<8x32xf32>
    %cst_20 = arith.constant dense<0.000000e+00> : vector<16x32xf32>
    %55 = tpu.matmul %53, %54, %cst_20 {dimension_numbers = #tpu.dot_dimension_numbers<[1], [0], [0], [1], [0, 0, 1, 1], [], []>} : vector<16x8xf32>, vector<8x32xf32>, vector<16x32xf32> -> vector<16x32xf32>
    %56 = arith.addf %35, %55 : vector<16x32xf32>
    %57 = vector.extract_strided_slice %8 {offsets = [0, 0, 16], sizes = [2, 8, 8], strides = [1, 1, 1]} : vector<2x8x32xf32> to vector<2x8x8xf32>
    %58 = vector.extract_strided_slice %10 {offsets = [0, 0, 16], sizes = [2, 8, 8], strides = [1, 1, 1]} : vector<2x8x32xf32> to vector<2x8x8xf32>
    %59 = vector.extract_strided_slice %12 {offsets = [0, 0, 16], sizes = [2, 8, 8], strides = [1, 1, 1]} : vector<2x8x32xf32> to vector<2x8x8xf32>
    "tpu.trace_start"() <{level = 10 : i32, message = "bqd,bkd->bqk"}> : () -> ()
    %cst_21 = arith.constant dense<0.000000e+00> : vector<2x8x8xf32>
    %60 = tpu.matmul %57, %58, %cst_21 {dimension_numbers = #tpu.dot_dimension_numbers<[2], [2], [1], [1], [0, 0, 0, 1, 1, 1], [0], [0]>} : vector<2x8x8xf32>, vector<2x8x8xf32>, vector<2x8x8xf32> -> vector<2x8x8xf32>
    "tpu.trace_stop"() : () -> ()
    %cst_22 = arith.constant 0.353553385 : f32
    %61 = vector.broadcast %cst_22 : f32 to vector<2x8x8xf32>
    %62 = arith.mulf %60, %61 : vector<2x8x8xf32>
    %cst_23 = arith.constant dense<0xFF800000> : vector<2x8xf32>
    %63 = vector.multi_reduction <maximumf>, %62, %cst_23 [2] : vector<2x8x8xf32> to vector<2x8xf32>
    %64 = vector.shape_cast %63 : vector<2x8xf32> to vector<2x8x1xf32>
    %65 = vector.broadcast %64 : vector<2x8x1xf32> to vector<2x8x8xf32>
    %66 = arith.subf %62, %65 : vector<2x8x8xf32>
    %67 = math.exp %66 : vector<2x8x8xf32>
    %cst_24 = arith.constant dense<0.000000e+00> : vector<2x8xf32>
    %68 = vector.multi_reduction <add>, %67, %cst_24 [2] : vector<2x8x8xf32> to vector<2x8xf32>
    %69 = vector.shape_cast %68 : vector<2x8xf32> to vector<2x8x1xf32>
    %70 = tpu.reciprocal %69 : vector<2x8x1xf32> -> vector<2x8x1xf32>
    %71 = vector.broadcast %70 : vector<2x8x1xf32> to vector<2x8x8xf32>
    %72 = arith.mulf %67, %71 : vector<2x8x8xf32>
    "tpu.trace_start"() <{level = 10 : i32, message = "bqk,bkd->bqd"}> : () -> ()
    %cst_25 = arith.constant dense<0.000000e+00> : vector<2x8x8xf32>
    %73 = tpu.matmul %72, %59, %cst_25 {dimension_numbers = #tpu.dot_dimension_numbers<[2], [1], [1], [2], [0, 0, 0, 1, 1, 2], [0], [0]>} : vector<2x8x8xf32>, vector<2x8x8xf32>, vector<2x8x8xf32> -> vector<2x8x8xf32>
    "tpu.trace_stop"() : () -> ()
    %74 = vector.shape_cast %73 : vector<2x8x8xf32> to vector<16x8xf32>
    %75 = vector.extract_strided_slice %13 {offsets = [16, 0], sizes = [8, 32], strides = [1, 1]} : vector<32x32xf32> to vector<8x32xf32>
    %cst_26 = arith.constant dense<0.000000e+00> : vector<16x32xf32>
    %76 = tpu.matmul %74, %75, %cst_26 {dimension_numbers = #tpu.dot_dimension_numbers<[1], [0], [0], [1], [0, 0, 1, 1], [], []>} : vector<16x8xf32>, vector<8x32xf32>, vector<16x32xf32> -> vector<16x32xf32>
    %77 = arith.addf %56, %76 : vector<16x32xf32>
    %78 = vector.extract_strided_slice %8 {offsets = [0, 0, 24], sizes = [2, 8, 8], strides = [1, 1, 1]} : vector<2x8x32xf32> to vector<2x8x8xf32>
    %79 = vector.extract_strided_slice %10 {offsets = [0, 0, 24], sizes = [2, 8, 8], strides = [1, 1, 1]} : vector<2x8x32xf32> to vector<2x8x8xf32>
    %80 = vector.extract_strided_slice %12 {offsets = [0, 0, 24], sizes = [2, 8, 8], strides = [1, 1, 1]} : vector<2x8x32xf32> to vector<2x8x8xf32>
    "tpu.trace_start"() <{level = 10 : i32, message = "bqd,bkd->bqk"}> : () -> ()
    %cst_27 = arith.constant dense<0.000000e+00> : vector<2x8x8xf32>
    %81 = tpu.matmul %78, %79, %cst_27 {dimension_numbers = #tpu.dot_dimension_numbers<[2], [2], [1], [1], [0, 0, 0, 1, 1, 1], [0], [0]>} : vector<2x8x8xf32>, vector<2x8x8xf32>, vector<2x8x8xf32> -> vector<2x8x8xf32>
    "tpu.trace_stop"() : () -> ()
    %cst_28 = arith.constant 0.353553385 : f32
    %82 = vector.broadcast %cst_28 : f32 to vector<2x8x8xf32>
    %83 = arith.mulf %81, %82 : vector<2x8x8xf32>
    %cst_29 = arith.constant dense<0xFF800000> : vector<2x8xf32>
    %84 = vector.multi_reduction <maximumf>, %83, %cst_29 [2] : vector<2x8x8xf32> to vector<2x8xf32>
    %85 = vector.shape_cast %84 : vector<2x8xf32> to vector<2x8x1xf32>
    %86 = vector.broadcast %85 : vector<2x8x1xf32> to vector<2x8x8xf32>
    %87 = arith.subf %83, %86 : vector<2x8x8xf32>
    %88 = math.exp %87 : vector<2x8x8xf32>
    %cst_30 = arith.constant dense<0.000000e+00> : vector<2x8xf32>
    %89 = vector.multi_reduction <add>, %88, %cst_30 [2] : vector<2x8x8xf32> to vector<2x8xf32>
    %90 = vector.shape_cast %89 : vector<2x8xf32> to vector<2x8x1xf32>
    %91 = tpu.reciprocal %90 : vector<2x8x1xf32> -> vector<2x8x1xf32>
    %92 = vector.broadcast %91 : vector<2x8x1xf32> to vector<2x8x8xf32>
    %93 = arith.mulf %88, %92 : vector<2x8x8xf32>
    "tpu.trace_start"() <{level = 10 : i32, message = "bqk,bkd->bqd"}> : () -> ()
    %cst_31 = arith.constant dense<0.000000e+00> : vector<2x8x8xf32>
    %94 = tpu.matmul %93, %80, %cst_31 {dimension_numbers = #tpu.dot_dimension_numbers<[2], [1], [1], [2], [0, 0, 0, 1, 1, 2], [0], [0]>} : vector<2x8x8xf32>, vector<2x8x8xf32>, vector<2x8x8xf32> -> vector<2x8x8xf32>
    "tpu.trace_stop"() : () -> ()
    %95 = vector.shape_cast %94 : vector<2x8x8xf32> to vector<16x8xf32>
    %96 = vector.extract_strided_slice %13 {offsets = [24, 0], sizes = [8, 32], strides = [1, 1]} : vector<32x32xf32> to vector<8x32xf32>
    %cst_32 = arith.constant dense<0.000000e+00> : vector<16x32xf32>
    %97 = tpu.matmul %95, %96, %cst_32 {dimension_numbers = #tpu.dot_dimension_numbers<[1], [0], [0], [1], [0, 0, 1, 1], [], []>} : vector<16x8xf32>, vector<8x32xf32>, vector<16x32xf32> -> vector<16x32xf32>
    %98 = arith.addf %77, %97 : vector<16x32xf32>
    %c0_33 = arith.constant 0 : index
    %c0_34 = arith.constant 0 : index
    %99 = vector.load %arg4[%c0_33, %c0_34] : memref<1x32xf32, #tpu.memory_space<vmem>>, vector<1x32xf32>
    %100 = vector.broadcast %99 : vector<1x32xf32> to vector<16x32xf32>
    %101 = arith.addf %98, %100 : vector<16x32xf32>
    %102 = arith.addf %1, %101 : vector<16x32xf32>
    %cst_35 = arith.constant dense<0.000000e+00> : vector<16xf32>
    %103 = vector.multi_reduction <add>, %102, %cst_35 [1] : vector<16x32xf32> to vector<16xf32>
    %104 = vector.shape_cast %103 : vector<16xf32> to vector<16x1xf32>
    %cst_36 = arith.constant 3.200000e+01 : f32
    %105 = vector.broadcast %cst_36 : f32 to vector<16x1xf32>
    %106 = arith.divf %104, %105 : vector<16x1xf32>
    %107 = vector.broadcast %106 : vector<16x1xf32> to vector<16x32xf32>
    %108 = arith.subf %102, %107 : vector<16x32xf32>
    %109 = vector.broadcast %106 : vector<16x1xf32> to vector<16x32xf32>
    %110 = arith.subf %102, %109 : vector<16x32xf32>
    %111 = arith.mulf %108, %110 : vector<16x32xf32>
    %cst_37 = arith.constant dense<0.000000e+00> : vector<16xf32>
    %112 = vector.multi_reduction <add>, %111, %cst_37 [1] : vector<16x32xf32> to vector<16xf32>
    %113 = vector.shape_cast %112 : vector<16xf32> to vector<16x1xf32>
    %cst_38 = arith.constant 3.200000e+01 : f32
    %114 = vector.broadcast %cst_38 : f32 to vector<16x1xf32>
    %115 = arith.divf %113, %114 : vector<16x1xf32>
    %116 = vector.broadcast %106 : vector<16x1xf32> to vector<16x32xf32>
    %117 = arith.subf %102, %116 : vector<16x32xf32>
    %cst_39 = arith.constant 9.99999974E-6 : f32
    %118 = vector.broadcast %cst_39 : f32 to vector<16x1xf32>
    %119 = arith.addf %115, %118 : vector<16x1xf32>
    %120 = math.rsqrt %119 : vector<16x1xf32>
    %121 = vector.broadcast %120 : vector<16x1xf32> to vector<16x32xf32>
    %122 = arith.mulf %117, %121 : vector<16x32xf32>
    %c0_40 = arith.constant 0 : index
    %c0_41 = arith.constant 0 : index
    %123 = vector.load %arg9[%c0_40, %c0_41] : memref<1x32xf32, #tpu.memory_space<vmem>>, vector<1x32xf32>
    %124 = vector.broadcast %123 : vector<1x32xf32> to vector<16x32xf32>
    %125 = arith.mulf %122, %124 : vector<16x32xf32>
    %c0_42 = arith.constant 0 : index
    %c0_43 = arith.constant 0 : index
    %126 = vector.load %arg10[%c0_42, %c0_43] : memref<1x32xf32, #tpu.memory_space<vmem>>, vector<1x32xf32>
    %127 = vector.broadcast %126 : vector<1x32xf32> to vector<16x32xf32>
    %128 = arith.addf %125, %127 : vector<16x32xf32>
    %c0_44 = arith.constant 0 : index
    %c0_45 = arith.constant 0 : index
    %129 = vector.load %arg5[%c0_44, %c0_45] : memref<32x64xf32, #tpu.memory_space<vmem>>, vector<32x64xf32>
    %cst_46 = arith.constant dense<0.000000e+00> : vector<16x64xf32>
    %130 = tpu.matmul %128, %129, %cst_46 {dimension_numbers = #tpu.dot_dimension_numbers<[1], [0], [0], [1], [0, 0, 1, 1], [], []>} : vector<16x32xf32>, vector<32x64xf32>, vector<16x64xf32> -> vector<16x64xf32>
    %c0_47 = arith.constant 0 : index
    %c0_48 = arith.constant 0 : index
    %131 = vector.load %arg6[%c0_47, %c0_48] : memref<1x64xf32, #tpu.memory_space<vmem>>, vector<1x64xf32>
    %132 = vector.broadcast %131 : vector<1x64xf32> to vector<16x64xf32>
    %133 = arith.addf %130, %132 : vector<16x64xf32>
    %cst_49 = arith.constant 0.000000e+00 : f32
    %134 = vector.broadcast %cst_49 : f32 to vector<16x64xf32>
    %135 = arith.maximumf %133, %134 : vector<16x64xf32>
    %c0_50 = arith.constant 0 : index
    %c0_51 = arith.constant 0 : index
    %136 = vector.load %arg7[%c0_50, %c0_51] : memref<64x32xf32, #tpu.memory_space<vmem>>, vector<64x32xf32>
    %cst_52 = arith.constant dense<0.000000e+00> : vector<16x32xf32>
    %137 = tpu.matmul %135, %136, %cst_52 {dimension_numbers = #tpu.dot_dimension_numbers<[1], [0], [0], [1], [0, 0, 1, 1], [], []>} : vector<16x64xf32>, vector<64x32xf32>, vector<16x32xf32> -> vector<16x32xf32>
    %c0_53 = arith.constant 0 : index
    %c0_54 = arith.constant 0 : index
    %138 = vector.load %arg8[%c0_53, %c0_54] : memref<1x32xf32, #tpu.memory_space<vmem>>, vector<1x32xf32>
    %139 = vector.broadcast %138 : vector<1x32xf32> to vector<16x32xf32>
    %140 = arith.addf %137, %139 : vector<16x32xf32>
    %141 = arith.addf %128, %140 : vector<16x32xf32>
    %cst_55 = arith.constant dense<0.000000e+00> : vector<16xf32>
    %142 = vector.multi_reduction <add>, %141, %cst_55 [1] : vector<16x32xf32> to vector<16xf32>
    %143 = vector.shape_cast %142 : vector<16xf32> to vector<16x1xf32>
    %cst_56 = arith.constant 3.200000e+01 : f32
    %144 = vector.broadcast %cst_56 : f32 to vector<16x1xf32>
    %145 = arith.divf %143, %144 : vector<16x1xf32>
    %146 = vector.broadcast %145 : vector<16x1xf32> to vector<16x32xf32>
    %147 = arith.subf %141, %146 : vector<16x32xf32>
    %148 = vector.broadcast %145 : vector<16x1xf32> to vector<16x32xf32>
    %149 = arith.subf %141, %148 : vector<16x32xf32>
    %150 = arith.mulf %147, %149 : vector<16x32xf32>
    %cst_57 = arith.constant dense<0.000000e+00> : vector<16xf32>
    %151 = vector.multi_reduction <add>, %150, %cst_57 [1] : vector<16x32xf32> to vector<16xf32>
    %152 = vector.shape_cast %151 : vector<16xf32> to vector<16x1xf32>
    %cst_58 = arith.constant 3.200000e+01 : f32
    %153 = vector.broadcast %cst_58 : f32 to vector<16x1xf32>
    %154 = arith.divf %152, %153 : vector<16x1xf32>
    %155 = vector.broadcast %145 : vector<16x1xf32> to vector<16x32xf32>
    %156 = arith.subf %141, %155 : vector<16x32xf32>
    %cst_59 = arith.constant 9.99999974E-6 : f32
    %157 = vector.broadcast %cst_59 : f32 to vector<16x1xf32>
    %158 = arith.addf %154, %157 : vector<16x1xf32>
    %159 = math.rsqrt %158 : vector<16x1xf32>
    %160 = vector.broadcast %159 : vector<16x1xf32> to vector<16x32xf32>
    %161 = arith.mulf %156, %160 : vector<16x32xf32>
    %c0_60 = arith.constant 0 : index
    %c0_61 = arith.constant 0 : index
    %162 = vector.load %arg11[%c0_60, %c0_61] : memref<1x32xf32, #tpu.memory_space<vmem>>, vector<1x32xf32>
    %163 = vector.broadcast %162 : vector<1x32xf32> to vector<16x32xf32>
    %164 = arith.mulf %161, %163 : vector<16x32xf32>
    %c0_62 = arith.constant 0 : index
    %c0_63 = arith.constant 0 : index
    %165 = vector.load %arg12[%c0_62, %c0_63] : memref<1x32xf32, #tpu.memory_space<vmem>>, vector<1x32xf32>
    %166 = vector.broadcast %165 : vector<1x32xf32> to vector<16x32xf32>
    %167 = arith.addf %164, %166 : vector<16x32xf32>
    %168 = vector.shape_cast %167 : vector<16x32xf32> to vector<2x8x32xf32>
    %c0_64 = arith.constant 0 : index
    %c0_65 = arith.constant 0 : index
    %c0_66 = arith.constant 0 : index
    %169 = vector.load %arg13[%c0_64, %c0_65, %c0_66] : memref<2x8x32xf32, #tpu.memory_space<vmem>>, vector<2x8x32xf32>
    tpu.vector_store %arg13[%c0_64, %c0_65, %c0_66], %168 {strides = array<i32>} : memref<2x8x32xf32, #tpu.memory_space<vmem>>, vector<2x8x32xf32>,
    return
  }
}

</mosaic_0001>

<bundles_post_ra>
// kernel: tpu_custom_call.1
= control target key start
LH: loop header
LB: loop body
LE: loop exit
PB: predicated region body
PF: predicated region fallthrough
CT: control target
= control target key end

     0   :  { %18 = vsyncpa [#allocation3], 0  ;;  %s2878_s0 = inlined_call_operand.hbm [shape: f32[2,8,32], index: 0, kind: input, shape index: {}]   ;;  %s2879_s1 = inlined_call_operand.vmem [shape: f32[32,96], index: 1, kind: input, shape index: {}]   ;;  %s2880_s2 = inlined_call_operand.vmem [shape: f32[1,96], index: 2, kind: input, shape index: {}]   ;;  %s2881_s3 = inlined_call_operand.vmem [shape: f32[32,32], index: 3, kind: input, shape index: {}]   ;;  %s2882_s4 = inlined_call_operand.vmem [shape: f32[1,32], index: 4, kind: input, shape index: {}]   ;;  %s2883_s5 = inlined_call_operand.vmem [shape: f32[32,64], index: 5, kind: input, shape index: {}]   ;;  %s2884_s6 = inlined_call_operand.vmem [shape: f32[1,64], index: 6, kind: input, shape index: {}]   ;;  %s2885_s7 = inlined_call_operand.vmem [shape: f32[64,32], index: 7, kind: input, shape index: {}]   ;;  %s2886_s8 = inlined_call_operand.vmem [shape: f32[1,32], index: 8, kind: input, shape index: {}]   ;;  %s2887_s9 = inlined_call_operand.vmem [shape: f32[1,32], index: 9, kind: input, shape index: {}]   ;;  %s2888_s10 = inlined_call_operand.vmem [shape: f32[1,32], index: 10, kind: input, shape index: {}]   ;;  %s2889_s11 = inlined_call_operand.vmem [shape: f32[1,32], index: 11, kind: input, shape index: {}]   ;;  %s2890_s12 = inlined_call_operand.vmem [shape: f32[1,32], index: 12, kind: input, shape index: {}]   ;;  %s2891_s13 = inlined_call_operand.hbm [shape: f32[2,8,32], index: 13, kind: output, shape index: {}]  }
   0x1   :  { %19 = vsyncpa [#allocation4], 0  ;;  %s2521_s25 = smov [#allocation2]   ;;  %s2473_s29 = scalar_lea.hbm %s2878_s0, 256 }
   0x2   :  { %s25_s26 = sshll.u32 %s2521_s25, 4  ;;  %p2474_p0 = scmp.ne.s32.totalorder %s2878_s0, %s2473_s29  ;;  %s26_s26 = int_to_ptr.vmem [resolvable:$true] %s25_s26 }
   0x3   :  { %p2477_p1 = scmp.lt.u32.totalorder %s2473_s29, %s2878_s0 }
   0x5   :  { %p2479_p2 = pnand %p2477_p1, %p2474_p0 }
   0x7   :  { %2482 = shalt.err (!%p2479_p2)
}
   0x8   :  { %s2483_s17 = scalar_lea.vmem %s26_s26, 256  ;;  %p2488_p4 = scmp.lt.s32.totalorder %s26_s26, %s26_s26 }
   0x9   :  { %p2484_p3 = scmp.ne.s32.totalorder %s26_s26, %s2483_s17  ;;  %p2489_p5 = scmp.lt.s32.totalorder %s2483_s17, %s2483_s17 }
   0xb   :  { %p2490_p6 = por %p2489_p5, %p2488_p4 }
   0xd   :  { %p2491_p7 = pnand %p2490_p6, %p2484_p3 }
   0xf   :  { %2494 = shalt.err (!%p2491_p7)
}
  0x10   :  { %s2522_s18 = smov 128   ;;  %s2523_s19 = smov 8  }
  0x11   :  { %31 = dma.hbm_to_vmem [thread:$0]  %s2878_s0, 256, %s26_s26, [#allocation3], %s2522_s18, %s2522_s18, %s2523_s19  }
  0x12   :  { %2517 = dma.done.wait [#allocation3], 256  }
  0x13   :  { %2518 = vsyncadd [#allocation3], 4294967040  ;;  %vm72_vm0 = vcmask 261120   ;;  %v61_v0 = vld [vmem:[%s2879_s1] sm:$0xff]  ;;  %v62_v1 = vld [vmem:[%s2879_s1 + $0x8] sm:$0xff]  ;;  %v2524_v8 = vmov 0.0  }
  0x14   :  { %v63_v2 = vld [vmem:[%s2879_s1 + $0x10] sm:$0xff]  ;;  %v2378_v3 = vpack.c.bf16 %v62_v1, %v61_v0  ;;  %v64_v4 = vld [vmem:[%s2879_s1 + $0x18] sm:$0xff]  ;;  %v2635_v5 = vld [vmem:[#allocation2] sm:$0xff]  ;;  %2258 = vmatprep.subr.mxu0 %v2524_v8  ;;  %vm2525_vm1 = vmmov 0   ;;  %s2526_s26 = smov 96   ;;  %s2527_s14 = smov 64  }
  0x15   :  { %v2382_v6 = vpack.c.bf16 %v64_v4, %v63_v2  ;;  %2245 = vmatprep.mubr.msk.f32.mxu1 %vm72_vm0, %v2635_v5  ;;  %v2639_v7 = vld [vmem:[#allocation2 + $0x8] sm:$0xff]  ;;  %2260 = vmatprep.mubr.msk.f32.mxu0 %vm2525_vm1, %v2524_v8  ;;  %v2125_v9 = vld [vmem:[%s2880_s2] ss:$0 sm:$0xff]  ;;  %s2528_s15 = smov 120   ;;  %vm161_vm2 = vcmask 64512   ;;  %s2529_s2 = smov 88  }
  0x16   :  { %2379 = vmatprep.subr.bf16.mxu1 %v2378_v3  ;;  %s2530_s16 = smov 80   ;;  %s2531_s17 = smov 56   ;;  %vm1978_vm3 = vcmask 523264  }
  0x17   :  { %2381 = vmatpush3.bf16.msra.mxu1 %v2378_v3  ;;  %s2532_s20 = smov 112   ;;  %s2533_s21 = smov 48  }
  0x18   :  { %2383 = vmatprep.subr.bf16.mxu1 %v2382_v6  ;;  %s2534_s22 = smov 72   ;;  %s2535_s23 = smov 104  }
  0x19   :  { %s2536_s0 = smov 40   ;;  %s2537_s25 = smov [#allocation5]  }
  0x1a   :  { %s2113_s27 = sshll.u32 %s2537_s25, 4  ;;  %s2114_s27 = int_to_ptr.vmem [resolvable:$true] %s2113_s27 }
  0x1b   :  { %2385 = vmatpush3.bf16.msra.mxu1 %v2382_v6  ;;  %s2495_s28 = scalar_lea.vmem %s2114_s27, 256  ;;  %p2500_p9 = scmp.lt.s32.totalorder %s2114_s27, %s2114_s27 }
  0x1c   :  { %2248 = vmatprep.subr.mxu1 %v2524_v8  ;;  %p2496_p8 = scmp.ne.s32.totalorder %s2114_s27, %s2495_s28  ;;  %p2501_p10 = scmp.lt.s32.totalorder %s2495_s28, %s2495_s28 }
  0x1e   :  { %2246 = vmatmul.mubr.msk.f32.vlgmr.msra.gmra.mrb[0].mxu1 %vm72_vm0, %v2639_v7  ;;  %p2502_p11 = por %p2501_p10, %p2500_p9 }
  0x1f   :  { %2250 = vmatprep.mubr.msk.f32.mxu1 %vm2525_vm1, %v2524_v8 }
  0x20   :  { %p2503_p12 = pnand %p2502_p11, %p2496_p8 }
  0xf1   :  { %v2247_v10 = vpop.f32.mrb[0].mxu1 }
  0xf2   :  { %v145_v11 = vpop.f32.mrb[1].mxu1  ;;  %v2655_v13 = vadd.f32 %v2247_v10, %v2125_v9 }
  0xf3   :  { %v2652_v12 = vadd.f32 %v2125_v9, %v145_v11 }
  0xf5   :  { %159 = vrot.lane.b32.xlu0 %v2652_v12, %s2526_s26 }
  0xf9   :  { %237 = vrot.lane.b32.xlu0 %v2655_v13, %s2526_s26 }
  0xfd   :  { %413 = vrot.lane.b32.xlu0 %v2655_v13, %s2527_s14 }
 0x101   :  { %567 = vrot.lane.b32.xlu0 %v2655_v13, %s2528_s15 }
 0x167   :  { %v160_v14 = vpop.permute.xlu0 %159 }
 0x168   :  { %2249 = vmatpush3.xpose.msk.msra.mxu1 %vm161_vm2, %v160_v14 }
 0x169   :  { %2253 = vmatprep.subr.mxu1 %v2524_v8 }
 0x16b   :  { %2251 = vmatmul.mubr.msk.f32.vlgmr.msra.gmra.mrb[2].mxu1 %vm161_vm2, %v2652_v12  ;;  %v238_v15 = vpop.permute.xlu0 %237 }
 0x16c   :  { %2254 = vmatpush3.xpose.msk.msra.mxu1 %vm161_vm2, %v238_v15  ;;  %2255 = vmatprep.mubr.msk.f32.mxu1 %vm2525_vm1, %v2524_v8 }
 0x16d   :  { %2263 = vmatprep.subr.mxu1 %v2524_v8 }
 0x16f   :  { %2256 = vmatmul.mubr.msk.f32.vlgmr.msra.gmra.mrb[4].mxu1 %vm161_vm2, %v2655_v13  ;;  %v414_v16 = vpop.permute.xlu0 %413 }
 0x170   :  { %2264 = vmatpush3.msra.mxu1 %v414_v16  ;;  %2265 = vmatprep.mubr.msk.f32.mxu1 %vm2525_vm1, %v2524_v8 }
 0x171   :  { %2273 = vmatprep.subr.mxu1 %v2524_v8 }
 0x173   :  { %v568_v25 = vpop.permute.xlu0 %567 }
 0x23e   :  { %v232_v17 = vpop.f32.mrb[2].mxu1 }
 0x23f   :  { %v313_v18 = vmul.f32 0.35355338, %v232_v17  ;;  %v2252_v19 = vpop.f32.mrb[3].mxu1 }
 0x241   :  { %v315_v20 = vsel %vm161_vm2, %v313_v18, -inf }
 0x242   :  { %316 = vmax.xlane.f32.xlu0 %v315_v20  ;;  %v309_v21 = vpop.f32.mrb[4].mxu1 }
 0x243   :  { %v314_v22 = vmul.f32 0.35355338, %v309_v21  ;;  %v2257_v23 = vpop.f32.mrb[5].mxu1  ;;  %v155_v21 = vld [vmem:[%s2881_s3 + $0x8] sm:$0xff] }
 0x245   :  { %v318_v24 = vsel %vm161_vm2, %v314_v22, -inf }
 0x246   :  { %319 = vmax.xlane.f32.xlu1 %v318_v24 }
 0x258   :  { %337 = vrot.lane.b32.xlu0 %v2652_v12, %s2527_s14 }
 0x25c   :  { %489 = vrot.lane.b32.xlu0 %v2652_v12, %s2528_s15 }
 0x2cf   :  { %v317_v26 = vpop.xlane.xlu0 %316 }
 0x2d0   :  { %v321_v33 = vsub.f32 %v313_v18, %v317_v26 }
 0x2d2   :  { %v323_v34 = vmul.f32 1.442695, %v321_v33 }
 0x2d3   :  { %v320_v27 = vpop.xlane.xlu1 %319  ;;  %v338_v28 = vpop.permute.xlu0 %337 }
 0x2d4   :  { %v322_v29 = vsub.f32 %v314_v22, %v320_v27  ;;  %2259 = vmatpush3.msra.mxu0 %v338_v28  ;;  %v154_v22 = vld [vmem:[%s2881_s3] sm:$0xff] }
 0x2d5   :  { %2268 = vmatprep.subr.mxu0 %v2524_v8 }
 0x2d6   :  { %v325_v30 = vmul.f32 1.442695, %v322_v29 }
 0x2d7   :  { %v490_v45 = vpop.permute.xlu0 %489 }
 0x2d8   :  { %2433 = vpow2.f32 %v325_v30 }
 0x2d9   :  { %2435 = vpow2.f32 %v323_v34 }
 0x2e2   :  { %v2434_v31 = vpop.eup %2433 }
 0x2e3   :  { %v330_v32 = vsel %vm161_vm2, %v2434_v31, 0.0  ;;  %v2436_v35 = vpop.eup %2435 }
 0x2e4   :  { %331 = vadd.xlane.f32.xlu1 %v330_v32  ;;  %v327_v36 = vsel %vm161_vm2, %v2436_v35, 0.0 }
 0x2f5   :  { %569 = vrot.lane.b32.xlu1 %v2655_v13, %s2529_s2 }
 0x319   :  { %328 = vadd.xlane.f32.xlu1 %v327_v36 }
 0x32a   :  { %491 = vrot.lane.b32.xlu1 %v2652_v12, %s2529_s2 }
 0x32e   :  { %985 = vrot.lane.b32.xlu1 %v2652_v12, %s2530_s16 }
 0x371   :  { %v332_v37 = vpop.xlane.xlu1 %331 }
 0x372   :  { %2437 = vrcp.f32 %v332_v37 }
 0x375   :  { %v570_v40 = vpop.permute.xlu1 %569 }
 0x37c   :  { %v2438_v38 = vpop.eup %2437 }
 0x37d   :  { %v336_v39 = vmul.f32 %v2438_v38, %v2434_v31 }
 0x37f   :  { %2266 = vmatmul.mubr.msk.f32.vlgmr.msra.gmra.mrb[6].mxu1 %vm161_vm2, %v336_v39 }
 0x380   :  { %2274 = vmatpush3.xpose.msk.msra.mxu1 %vm161_vm2, %v570_v40  ;;  %2275 = vmatprep.mubr.msk.f32.mxu1 %vm2525_vm1, %v2524_v8 }
 0x381   :  { %2283 = vmatprep.subr.mxu1 %v2524_v8 }
 0x383   :  { %2276 = vmatmul.mubr.msk.f32.vlgmr.msra.gmra.mrb[8].mxu1 %vm161_vm2, %v568_v25 }
 0x384   :  { %2285 = vmatprep.mubr.msk.f32.mxu1 %vm2525_vm1, %v2524_v8 }
 0x3a6   :  { %v329_v41 = vpop.xlane.xlu1 %328 }
 0x3a7   :  { %2439 = vrcp.f32 %v329_v41 }
 0x3aa   :  { %v492_v44 = vpop.permute.xlu1 %491 }
 0x3ae   :  { %v986_v11 = vpop.permute.xlu1 %985 }
 0x3b1   :  { %v2440_v42 = vpop.eup %2439 }
 0x3b2   :  { %v335_v43 = vmul.f32 %v2440_v42, %v2436_v35 }
 0x3b4   :  { %2261 = vmatmul.mubr.msk.f32.vlgmr.msra.gmra.mrb[0].mxu0 %vm161_vm2, %v335_v43 }
 0x3b5   :  { %2269 = vmatpush3.xpose.msk.msra.mxu0 %vm161_vm2, %v492_v44  ;;  %2270 = vmatprep.mubr.msk.f32.mxu0 %vm2525_vm1, %v2524_v8 }
 0x3b6   :  { %2278 = vmatprep.subr.mxu0 %v2524_v8 }
 0x3b8   :  { %2271 = vmatmul.mubr.msk.f32.vlgmr.msra.gmra.mrb[2].mxu0 %vm161_vm2, %v490_v45 }
 0x3b9   :  { %2280 = vmatprep.mubr.msk.f32.mxu0 %vm2525_vm1, %v2524_v8 }
 0x452   :  { %v2700_v46 = vpop.f32.mrb[6].mxu1 }
 0x453   :  { %v2267_v47 = vpop.f32.mrb[7].mxu1 }
 0x456   :  { %v641_v48 = vpop.f32.mrb[8].mxu1 }
 0x457   :  { %v646_v49 = vmul.f32 0.35355338, %v641_v48  ;;  %v2277_v50 = vpop.f32.mrb[9].mxu1 }
 0x459   :  { %v650_v51 = vsel %vm161_vm2, %v646_v49, -inf }
 0x45a   :  { %651 = vmax.xlane.f32.xlu0 %v650_v51 }
 0x470   :  { %745 = vrot.lane.b32.xlu0 %v2655_v13, %s2531_s17 }
 0x474   :  { %983 = vrot.lane.b32.xlu0 %v2652_v12, %s2532_s20 }
 0x478   :  { %1063 = vrot.lane.b32.xlu0 %v2655_v13, %s2530_s16 }
 0x487   :  { %v2707_v52 = vpop.f32.mrb[0].mxu0 }
 0x488   :  { %v2262_v53 = vpop.f32.mrb[1].mxu0 }
 0x48b   :  { %v563_v54 = vpop.f32.mrb[2].mxu0 }
 0x48c   :  { %v2272_v55 = vpop.f32.mrb[3].mxu0  ;;  %v645_v56 = vmul.f32 0.35355338, %v563_v54 }
 0x48e   :  { %v647_v57 = vsel %vm161_vm2, %v645_v56, -inf }
 0x497   :  { %648 = vmax.xlane.f32.xlu0 %v647_v57 }
 0x4ad   :  { %669 = vrot.lane.b32.xlu0 %v2652_v12, %s2531_s17 }
 0x4b1   :  { %1163 = vrot.lane.b32.xlu0 %v2652_v12, %s2533_s21 }
 0x4b5   :  { %1400 = vrot.lane.b32.xlu0 %v2652_v12, %s2534_s22 }
 0x4b9   :  { %1478 = vrot.lane.b32.xlu0 %v2655_v13, %s2534_s22 }
 0x4bd   :  { %1398 = vrot.lane.b32.xlu0 %v2652_v12, %s2535_s23 }
 0x4c1   :  { %1476 = vrot.lane.b32.xlu0 %v2655_v13, %s2535_s23 }
 0x4e7   :  { %v652_v58 = vpop.xlane.xlu0 %651 }
 0x4e8   :  { %v654_v59 = vsub.f32 %v646_v49, %v652_v58 }
 0x4ea   :  { %v657_v60 = vmul.f32 1.442695, %v654_v59 }
 0x4eb   :  { %v746_v61 = vpop.permute.xlu0 %745 }
 0x4ec   :  { %2441 = vpow2.f32 %v657_v60  ;;  %2284 = vmatpush3.msra.mxu1 %v746_v61 }
 0x4ed   :  { %2298 = vmatprep.subr.mxu1 %v2524_v8 }
 0x4ef   :  { %v984_v0 = vpop.permute.xlu0 %983 }
 0x4f3   :  { %v1064_v1 = vpop.permute.xlu0 %1063 }
 0x4f6   :  { %v2442_v62 = vpop.eup %2441 }
 0x4f7   :  { %v662_v63 = vsel %vm161_vm2, %v2442_v62, 0.0 }
 0x4f8   :  { %663 = vadd.xlane.f32.xlu1 %v662_v63 }
 0x509   :  { %1061 = vrot.lane.b32.xlu1 %v2655_v13, %s2532_s20 }
 0x524   :  { %v649_v2 = vpop.xlane.xlu0 %648 }
 0x525   :  { %v653_v3 = vsub.f32 %v645_v56, %v649_v2 }
 0x527   :  { %v655_v4 = vmul.f32 1.442695, %v653_v3 }
 0x528   :  { %v670_v6 = vpop.permute.xlu0 %669 }
 0x529   :  { %2443 = vpow2.f32 %v655_v4  ;;  %2279 = vmatpush3.msra.mxu0 %v670_v6 }
 0x52a   :  { %2288 = vmatprep.subr.mxu0 %v155_v21 }
 0x52c   :  { %v1164_v35 = vpop.permute.xlu0 %1163 }
 0x530   :  { %v1401_v50 = vpop.permute.xlu0 %1400 }
 0x533   :  { %v2444_v9 = vpop.eup %2443 }
 0x534   :  { %v659_v10 = vsel %vm161_vm2, %v2444_v9, 0.0  ;;  %v1479_v54 = vpop.permute.xlu0 %1478 }
 0x535   :  { %660 = vadd.xlane.f32.xlu1 %v659_v10 }
 0x538   :  { %v1399_v56 = vpop.permute.xlu0 %1398 }
 0x53c   :  { %v1477_v61 = vpop.permute.xlu0 %1476 }
 0x585   :  { %v664_v14 = vpop.xlane.xlu1 %663 }
 0x586   :  { %2445 = vrcp.f32 %v664_v14 }
 0x589   :  { %v1062_v17 = vpop.permute.xlu1 %1061 }
 0x590   :  { %v2446_v15 = vpop.eup %2445 }
 0x591   :  { %v668_v16 = vmul.f32 %v2446_v15, %v2442_v62 }
 0x593   :  { %2286 = vmatmul.mubr.msk.f32.vlgmr.msra.gmra.mrb[10].mxu1 %vm161_vm2, %v668_v16 }
 0x594   :  { %2299 = vmatpush3.xpose.msk.msra.mxu1 %vm161_vm2, %v986_v11  ;;  %2300 = vmatprep.mubr.msk.f32.mxu1 %vm2525_vm1, %v2524_v8 }
 0x595   :  { %2303 = vmatprep.subr.mxu1 %v2524_v8 }
 0x597   :  { %2301 = vmatmul.mubr.msk.f32.vlgmr.msra.gmra.mrb[12].mxu1 %vm161_vm2, %v984_v0 }
 0x598   :  { %2304 = vmatpush3.xpose.msk.msra.mxu1 %vm161_vm2, %v1064_v1  ;;  %2305 = vmatprep.mubr.msk.f32.mxu1 %vm2525_vm1, %v2524_v8 }
 0x599   :  { %2313 = vmatprep.subr.mxu1 %v2524_v8 }
 0x59b   :  { %2306 = vmatmul.mubr.msk.f32.vlgmr.msra.gmra.mrb[14].mxu1 %vm161_vm2, %v1062_v17 }
 0x59c   :  { %2315 = vmatprep.mubr.msk.f32.mxu1 %vm2525_vm1, %v2524_v8 }
 0x5c2   :  { %v661_v18 = vpop.xlane.xlu1 %660 }
 0x5c3   :  { %2447 = vrcp.f32 %v661_v18 }
 0x5cd   :  { %v2448_v19 = vpop.eup %2447 }
 0x5ce   :  { %v667_v20 = vmul.f32 %v2448_v19, %v2444_v9 }
 0x5d0   :  { %2281 = vmatmul.mubr.msk.f32.vlgmr.msra.gmra.mrb[4].mxu0 %vm161_vm2, %v667_v20 }
 0x5d1   :  { %2289 = vmatpush3.msra.mxu0 %v155_v21 }
 0x5d2   :  { %2293 = vmatprep.subr.mxu0 %v154_v22 }
 0x666   :  { %v817_v23 = vpop.f32.mrb[10].mxu1 }
 0x667   :  { %v2287_v24 = vpop.f32.mrb[11].mxu1 }
 0x66a   :  { %v1057_v25 = vpop.f32.mrb[12].mxu1 }
 0x66b   :  { %v1139_v26 = vmul.f32 0.35355338, %v1057_v25  ;;  %v2302_v27 = vpop.f32.mrb[13].mxu1 }
 0x66d   :  { %v1141_v28 = vsel %vm161_vm2, %v1139_v26, -inf }
 0x66e   :  { %v1135_v29 = vpop.f32.mrb[14].mxu1  ;;  %1142 = vmax.xlane.f32.xlu1 %v1141_v28 }
 0x66f   :  { %v1140_v30 = vmul.f32 0.35355338, %v1135_v29  ;;  %v2307_v31 = vpop.f32.mrb[15].mxu1 }
 0x670   :  { %v2160_v31 = vld [vmem:[%s2882_s4] ss:$0 sm:$0xff] }
 0x671   :  { %v1144_v32 = vsel %vm161_vm2, %v1140_v30, -inf }
 0x672   :  { %1145 = vmax.xlane.f32.xlu1 %v1144_v32 }
 0x6a3   :  { %v741_v33 = vpop.f32.mrb[4].mxu0 }
 0x6a4   :  { %v2282_v34 = vpop.f32.mrb[5].mxu0  ;;  %2290 = vmatprep.mubr.msk.f32.mxu0 %vm161_vm2, %v741_v33 }
 0x6a5   :  { %2291 = vmatmul.mubr.msk.f32.vlgmr.msra.gmra.mrb[6].mxu0 %vm161_vm2, %v817_v23 }
 0x6a6   :  { %2295 = vmatprep.mubr.msk.f32.mxu0 %vm161_vm2, %v2707_v52  ;;  %2294 = vmatpush3.msra.mxu0 %v154_v22 }
 0x6a7   :  { %2308 = vmatprep.subr.mxu0 %v2524_v8 }
 0x6ad   :  { %2296 = vmatmul.mubr.msk.f32.vlgmr.msra.gmra.mrb[6].mxu0 %vm161_vm2, %v2700_v46  ;;  %v156_v46 = vld [vmem:[%s2881_s3 + $0x10] sm:$0xff] }
 0x6ae   :  { %2309 = vmatpush3.msra.mxu0 %v1164_v35  ;;  %2310 = vmatprep.mubr.msk.f32.mxu0 %vm2525_vm1, %v2524_v8 }
 0x6af   :  { %2318 = vmatprep.subr.mxu0 %v156_v46 }
 0x6fb   :  { %v1143_v36 = vpop.xlane.xlu1 %1142 }
 0x6fc   :  { %v1147_v37 = vsub.f32 %v1139_v26, %v1143_v36 }
 0x6fe   :  { %v1149_v38 = vmul.f32 1.442695, %v1147_v37 }
 0x6ff   :  { %v1146_v39 = vpop.xlane.xlu1 %1145 }
 0x700   :  { %2449 = vpow2.f32 %v1149_v38  ;;  %v1148_v40 = vsub.f32 %v1140_v30, %v1146_v39 }
 0x702   :  { %v1151_v41 = vmul.f32 1.442695, %v1148_v40 }
 0x704   :  { %2451 = vpow2.f32 %v1151_v41 }
 0x70a   :  { %v2450_v42 = vpop.eup %2449 }
 0x70b   :  { %v1153_v43 = vsel %vm161_vm2, %v2450_v42, 0.0 }
 0x70c   :  { %1154 = vadd.xlane.f32.xlu1 %v1153_v43 }
 0x70e   :  { %v2452_v44 = vpop.eup %2451 }
 0x70f   :  { %v1156_v45 = vsel %vm161_vm2, %v2452_v44, 0.0 }
 0x710   :  { %1157 = vadd.xlane.f32.xlu1 %v1156_v45 }
 0x721   :  { %1239 = vrot.lane.b32.xlu1 %v2655_v13, %s2533_s21 }
 0x799   :  { %v1155_v47 = vpop.xlane.xlu1 %1154 }
 0x79a   :  { %2453 = vrcp.f32 %v1155_v47 }
 0x79d   :  { %v1158_v48 = vpop.xlane.xlu1 %1157 }
 0x79e   :  { %2455 = vrcp.f32 %v1158_v48 }
 0x7a1   :  { %v1240_v49 = vpop.permute.xlu1 %1239 }
 0x7a2   :  { %2314 = vmatpush3.msra.mxu1 %v1240_v49  ;;  %v1870_v49 = vld [vmem:[%s2883_s5 + $0x8] sm:$0xff] }
 0x7a3   :  { %2323 = vmatprep.subr.mxu1 %v2524_v8 }
 0x7a4   :  { %v2454_v51 = vpop.eup %2453 }
 0x7a5   :  { %v1161_v52 = vmul.f32 %v2454_v51, %v2450_v42  ;;  %v1871_v51 = vld [vmem:[%s2883_s5 + $0x10] sm:$0xff] }
 0x7a7   :  { %2311 = vmatmul.mubr.msk.f32.vlgmr.msra.gmra.mrb[8].mxu0 %vm161_vm2, %v1161_v52  ;;  %v1872_v52 = vld [vmem:[%s2883_s5 + $0x18] sm:$0xff] }
 0x7a8   :  { %v2456_v53 = vpop.eup %2455  ;;  %2319 = vmatpush3.msra.mxu0 %v156_v46 }
 0x7a9   :  { %v1162_v55 = vmul.f32 %v2456_v53, %v2452_v44  ;;  %2328 = vmatprep.subr.mxu0 %v2524_v8  ;;  %v2390_v53 = vpack.c.bf16 %v1872_v52, %v1871_v51  ;;  %v2169_v51 = vld [vmem:[%s2889_s11] ss:$0 sm:$0xff] }
 0x7ab   :  { %2316 = vmatmul.mubr.msk.f32.vlgmr.msra.gmra.mrb[16].mxu1 %vm161_vm2, %v1162_v55  ;;  %v1964_v55 = vld [vmem:[%s2885_s7 + $0x8] sm:$0xff] }
 0x7ac   :  { %2324 = vmatpush3.xpose.msk.msra.mxu1 %vm161_vm2, %v1401_v50  ;;  %2325 = vmatprep.mubr.msk.f32.mxu1 %vm2525_vm1, %v2524_v8 }
 0x7ad   :  { %2333 = vmatprep.subr.mxu1 %v2524_v8 }
 0x7af   :  { %2326 = vmatmul.mubr.msk.f32.vlgmr.msra.gmra.mrb[18].mxu1 %vm161_vm2, %v1399_v56  ;;  %v1965_v56 = vld [vmem:[%s2885_s7 + $0x10] sm:$0xff] }
 0x7b0   :  { %2335 = vmatprep.mubr.msk.f32.mxu1 %vm2525_vm1, %v2524_v8 }
 0x87a   :  { %v1235_v57 = vpop.f32.mrb[8].mxu0 }
 0x87b   :  { %v2312_v58 = vpop.f32.mrb[9].mxu0  ;;  %2320 = vmatprep.mubr.msk.f32.mxu0 %vm161_vm2, %v1235_v57 }
 0x87c   :  { %v1966_v58 = vld [vmem:[%s2885_s7 + $0x18] sm:$0xff] }
 0x87e   :  { %v1311_v59 = vpop.f32.mrb[16].mxu1 }
 0x87f   :  { %v2317_v60 = vpop.f32.mrb[17].mxu1  ;;  %2321 = vmatmul.mubr.msk.f32.vlgmr.msra.gmra.mrb[6].mxu0 %vm161_vm2, %v1311_v59  ;;  %v2398_v59 = vpack.c.bf16 %v1966_v58, %v1965_v56 }
 0x880   :  { %2329 = vmatpush3.xpose.msk.msra.mxu0 %vm161_vm2, %v1479_v54  ;;  %2330 = vmatprep.mubr.msk.f32.mxu0 %vm2525_vm1, %v2524_v8  ;;  %v1963_v54 = vld [vmem:[%s2885_s7] sm:$0xff] }
 0x881   :  { %2338 = vmatprep.subr.mxu0 %v2524_v8  ;;  %v2394_v57 = vpack.c.bf16 %v1964_v55, %v1963_v54  ;;  %v1967_v60 = vld [vmem:[%s2885_s7 + $0x20] sm:$0xff] }
 0x882   :  { %v1472_v62 = vpop.f32.mrb[18].mxu1  ;;  %v2170_v55 = vld [vmem:[%s2890_s12] ss:$0 sm:$0xff] }
 0x883   :  { %v1554_v63 = vmul.f32 0.35355338, %v1472_v62  ;;  %v2327_v0 = vpop.f32.mrb[19].mxu1  ;;  %2331 = vmatmul.mubr.msk.f32.vlgmr.msra.gmra.mrb[10].mxu0 %vm161_vm2, %v1477_v61  ;;  %v1968_v61 = vld [vmem:[%s2885_s7 + $0x28] sm:$0xff] }
 0x884   :  { %2340 = vmatprep.mubr.msk.f32.mxu0 %vm2525_vm1, %v2524_v8  ;;  %v2402_v62 = vpack.c.bf16 %v1968_v61, %v1967_v60 }
 0x885   :  { %v1556_v1 = vsel %vm161_vm2, %v1554_v63, -inf }
 0x886   :  { %1557 = vmax.xlane.f32.xlu1 %v1556_v1 }
 0x913   :  { %v1558_v2 = vpop.xlane.xlu1 %1557 }
 0x914   :  { %v1562_v3 = vsub.f32 %v1554_v63, %v1558_v2 }
 0x916   :  { %v1564_v4 = vmul.f32 1.442695, %v1562_v3 }
 0x918   :  { %2457 = vpow2.f32 %v1564_v4 }
 0x922   :  { %v2458_v14 = vpop.eup %2457 }
 0x923   :  { %v1568_v15 = vsel %vm161_vm2, %v2458_v14, 0.0 }
 0x956   :  { %v1550_v6 = vpop.f32.mrb[10].mxu0 }
 0x957   :  { %v1555_v9 = vmul.f32 0.35355338, %v1550_v6  ;;  %v2332_v10 = vpop.f32.mrb[11].mxu0 }
 0x959   :  { %v1559_v11 = vsel %vm161_vm2, %v1555_v9, -inf }
 0x95a   :  { %1560 = vmax.xlane.f32.xlu0 %v1559_v11 }
 0x95e   :  { %1569 = vadd.xlane.f32.xlu0 %v1568_v15 }
 0x974   :  { %1578 = vrot.lane.b32.xlu0 %v2652_v12, %s2536_s0  ;;  %v157_v12 = vld [vmem:[%s2881_s3 + $0x18] sm:$0xff] }
 0x9e7   :  { %v1561_v8 = vpop.xlane.xlu0 %1560 }
 0x9e8   :  { %v1563_v16 = vsub.f32 %v1555_v9, %v1561_v8  ;;  %v2161_v9 = vld [vmem:[%s2887_s9] ss:$0 sm:$0xff] }
 0x9e9   :  { %v2162_v8 = vld [vmem:[%s2888_s10] ss:$0 sm:$0xff] }
 0x9ea   :  { %v1566_v17 = vmul.f32 1.442695, %v1563_v16 }
 0x9eb   :  { %v1570_v18 = vpop.xlane.xlu0 %1569 }
 0x9ec   :  { %2459 = vpow2.f32 %v1566_v17 }
 0x9ed   :  { %2461 = vrcp.f32 %v1570_v18 }
 0x9ef   :  { %v1579_v19 = vpop.permute.xlu0 %1578 }
 0x9f0   :  { %2334 = vmatpush3.msra.mxu1 %v1579_v19  ;;  %v1969_v19 = vld [vmem:[%s2885_s7 + $0x30] sm:$0xff] }
 0x9f6   :  { %v2460_v20 = vpop.eup %2459 }
 0x9f7   :  { %v2462_v21 = vpop.eup %2461  ;;  %v1571_v22 = vsel %vm161_vm2, %v2460_v20, 0.0 }
 0x9f8   :  { %v1576_v23 = vmul.f32 %v2462_v21, %v2458_v14  ;;  %1572 = vadd.xlane.f32.xlu1 %v1571_v22  ;;  %v2163_v22 = vld [vmem:[%s2884_s6] ss:$0 sm:$0xff] }
 0x9fa   :  { %2336 = vmatmul.mubr.msk.f32.vlgmr.msra.gmra.mrb[20].mxu1 %vm161_vm2, %v1576_v23 }
 0xa09   :  { %1654 = vrot.lane.b32.xlu1 %v2655_v13, %s2536_s0 }
 0xa85   :  { %v1573_v24 = vpop.xlane.xlu1 %1572 }
 0xa86   :  { %2463 = vrcp.f32 %v1573_v24 }
 0xa89   :  { %v1655_v25 = vpop.permute.xlu1 %1654 }
 0xa8a   :  { %2339 = vmatpush3.msra.mxu0 %v1655_v25 }
 0xa8b   :  { %2343 = vmatprep.subr.mxu0 %v157_v12 }
 0xa90   :  { %v2464_v26 = vpop.eup %2463 }
 0xa91   :  { %v1577_v27 = vmul.f32 %v2464_v26, %v2460_v20  ;;  %v1970_v20 = vld [vmem:[%s2885_s7 + $0x38] sm:$0xff] }
 0xa92   :  { %v2406_v21 = vpack.c.bf16 %v1970_v20, %v1969_v19 }
 0xa93   :  { %2341 = vmatmul.mubr.msk.f32.vlgmr.msra.gmra.mrb[12].mxu0 %vm161_vm2, %v1577_v27 }
 0xa94   :  { %2344 = vmatpush3.msra.mxu0 %v157_v12 }
 0xa95   :  { %2395 = vmatprep.subr.bf16.mxu0 %v2394_v57 }
 0xacd   :  { %v1650_v28 = vpop.f32.mrb[20].mxu1 }
 0xace   :  { %v2337_v29 = vpop.f32.mrb[21].mxu1  ;;  %2345 = vmatprep.mubr.msk.f32.mxu0 %vm161_vm2, %v1650_v28  ;;  %v2166_v28 = vld [vmem:[%s2886_s8] ss:$0 sm:$0xff] }
 0xb66   :  { %v1726_v30 = vpop.f32.mrb[12].mxu0 }
 0xb67   :  { %v2342_v13 = vpop.f32.mrb[13].mxu0  ;;  %2346 = vmatmul.mubr.msk.f32.vlgmr.msra.gmra.mrb[6].mxu0 %vm161_vm2, %v1726_v30 }
 0xb68   :  { %2397 = vmatpush3.bf16.msra.mxu0 %v2394_v57 }
 0xb69   :  { %2399 = vmatprep.subr.bf16.mxu0 %v2398_v59 }
 0xb6c   :  { %2401 = vmatpush3.bf16.msra.mxu0 %v2398_v59 }
 0xb6d   :  { %2403 = vmatprep.subr.bf16.mxu0 %v2402_v62 }
 0xb70   :  { %2405 = vmatpush3.bf16.msra.mxu0 %v2402_v62 }
 0xb71   :  { %2407 = vmatprep.subr.bf16.mxu0 %v2406_v21 }
 0xb74   :  { %2409 = vmatpush3.bf16.msra.mxu0 %v2406_v21 }
 0xc3a   :  { %v2347_v32 = vpop.f32.mrb[6].mxu0 }
 0xc3b   :  { %v1821_v33 = vadd.f32 %v2347_v32, %v2160_v31  ;;  %v1802_v34 = vpop.f32.mrb[7].mxu0 }
 0xc3c   :  { %v1820_v35 = vadd.f32 %v2160_v31, %v1802_v34 }
 0xc3d   :  { %v1823_v36 = vadd.f32 %v1821_v33, %v2639_v7 }
 0xc3e   :  { %v1822_v37 = vadd.f32 %v1820_v35, %v2635_v5  ;;  %v1869_v5 = vld [vmem:[%s2883_s5] sm:$0xff] }
 0xc3f   :  { %v1827_v38 = vsel %vm72_vm0, %v1823_v36, 0.0  ;;  %v2386_v50 = vpack.c.bf16 %v1870_v49, %v1869_v5 }
 0xc40   :  { %1828 = vadd.xlane.f32.xlu0 %v1827_v38  ;;  %v1824_v39 = vsel %vm72_vm0, %v1822_v37, 0.0 }
 0xc41   :  { %1825 = vadd.xlane.f32.xlu1 %v1824_v39  ;;  %2387 = vmatprep.subr.bf16.mxu1 %v2386_v50 }
 0xc42   :  { %2389 = vmatpush3.bf16.msra.mxu1 %v2386_v50 }
 0xc43   :  { %2391 = vmatprep.subr.bf16.mxu1 %v2390_v53 }
 0xc46   :  { %2393 = vmatpush3.bf16.msra.mxu1 %v2390_v53 }
 0xccd   :  { %v1829_v40 = vpop.xlane.xlu0 %1828 }
 0xcce   :  { %v1832_v41 = vmul.f32 0.03125, %v1829_v40  ;;  %v1826_v42 = vpop.xlane.xlu1 %1825 }
 0xccf   :  { %v1831_v43 = vmul.f32 0.03125, %v1826_v42 }
 0xcd0   :  { %v1834_v44 = vsub.f32 %v1823_v36, %v1832_v41 }
 0xcd1   :  { %v1833_v45 = vsub.f32 %v1822_v37, %v1831_v43 }
 0xcd2   :  { %v1836_v46 = vmul.f32 %v1834_v44, %v1834_v44 }
 0xcd3   :  { %v1835_v47 = vmul.f32 %v1833_v45, %v1833_v45 }
 0xcd4   :  { %v1840_v48 = vsel %vm72_vm0, %v1836_v46, 0.0 }
 0xcd5   :  { %1841 = vadd.xlane.f32.xlu1 %v1840_v48  ;;  %v1837_v7 = vsel %vm72_vm0, %v1835_v47, 0.0 }
 0xcd6   :  { %1838 = vadd.xlane.f32.xlu0 %v1837_v7 }
 0xd62   :  { %v1842_v63 = vpop.xlane.xlu1 %1841 }
 0xd63   :  { %v1844_v0 = vmul.f32 0.03125, %v1842_v63  ;;  %v1839_v1 = vpop.xlane.xlu0 %1838 }
 0xd64   :  { %v1843_v2 = vmul.f32 0.03125, %v1839_v1 }
 0xd65   :  { %v1846_v3 = vadd.f32 1e-05, %v1844_v0 }
 0xd66   :  { %v1845_v4 = vadd.f32 1e-05, %v1843_v2 }
 0xd67   :  { %2465 = vrsqrt.f32 %v1846_v3 }
 0xd68   :  { %2467 = vrsqrt.f32 %v1845_v4 }
 0xd71   :  { %v2466_v6 = vpop.eup %2465 }
 0xd72   :  { %v2468_v10 = vpop.eup %2467  ;;  %v1850_v11 = vmul.f32 %v2466_v6, %v1834_v44 }
 0xd73   :  { %v1849_v14 = vmul.f32 %v2468_v10, %v1833_v45 }
 0xd74   :  { %v1859_v15 = vmul.f32 %v2161_v9, %v1850_v11 }
 0xd75   :  { %v1858_v16 = vmul.f32 %v2161_v9, %v1849_v14 }
 0xd76   :  { %v1868_v18 = vadd.f32 %v2162_v8, %v1859_v15 }
 0xd77   :  { %v1867_v17 = vadd.f32 %v2162_v8, %v1858_v16 }
 0xd79   :  { %2356 = vmatprep.mubr.msk.f32.mxu1 %vm72_vm0, %v1867_v17 }
 0xd7a   :  { %2357 = vmatmul.mubr.msk.f32.vlgmr.msra.gmra.mrb[22].mxu1 %vm72_vm0, %v1868_v18 }
 0xe4d   :  { %v2358_v23 = vpop.f32.mrb[22].mxu1 }
 0xe4e   :  { %v1958_v24 = vadd.f32 %v2358_v23, %v2163_v22  ;;  %v1952_v12 = vpop.f32.mrb[23].mxu1 }
 0xe4f   :  { %v1953_v25 = vadd.f32 %v2163_v22, %v1952_v12 }
 0xe50   :  { %v1962_v27 = vmax.f32 %v1958_v24, 0.0 }
 0xe51   :  { %v1961_v26 = vmax.f32 %v1953_v25, 0.0 }
 0xe53   :  { %2375 = vmatprep.mubr.msk.f32.mxu0 %vm1978_vm3, %v1961_v26 }
 0xe54   :  { %2376 = vmatmul.mubr.msk.f32.vlgmr.msra.gmra.mrb[14].mxu0 %vm1978_vm3, %v1962_v27 }
 0xf27   :  { %v2377_v29 = vpop.f32.mrb[14].mxu0 }
 0xf28   :  { %v2057_v30 = vadd.f32 %v2377_v29, %v2166_v28  ;;  %v2051_v13 = vpop.f32.mrb[15].mxu0 }
 0xf29   :  { %v2052_v31 = vadd.f32 %v2166_v28, %v2051_v13 }
 0xf2a   :  { %v2061_v32 = vadd.f32 %v2057_v30, %v1868_v18 }
 0xf2b   :  { %v2060_v33 = vadd.f32 %v2052_v31, %v1867_v17 }
 0xf2c   :  { %v2065_v34 = vsel %vm72_vm0, %v2061_v32, 0.0 }
 0xf2d   :  { %2066 = vadd.xlane.f32.xlu1 %v2065_v34  ;;  %v2062_v35 = vsel %vm72_vm0, %v2060_v33, 0.0 }
 0xf2e   :  { %2063 = vadd.xlane.f32.xlu0 %v2062_v35 }
 0xfba   :  { %v2067_v36 = vpop.xlane.xlu1 %2066 }
 0xfbb   :  { %v2069_v37 = vmul.f32 0.03125, %v2067_v36  ;;  %v2064_v38 = vpop.xlane.xlu0 %2063 }
 0xfbc   :  { %v2068_v39 = vmul.f32 0.03125, %v2064_v38 }
 0xfbd   :  { %v2071_v40 = vsub.f32 %v2061_v32, %v2069_v37 }
 0xfbe   :  { %v2070_v41 = vsub.f32 %v2060_v33, %v2068_v39 }
 0xfbf   :  { %v2073_v42 = vmul.f32 %v2071_v40, %v2071_v40 }
 0xfc0   :  { %v2072_v43 = vmul.f32 %v2070_v41, %v2070_v41 }
 0xfc1   :  { %v2077_v44 = vsel %vm72_vm0, %v2073_v42, 0.0 }
 0xfc2   :  { %2078 = vadd.xlane.f32.xlu1 %v2077_v44  ;;  %v2074_v45 = vsel %vm72_vm0, %v2072_v43, 0.0 }
 0xfc3   :  { %2075 = vadd.xlane.f32.xlu0 %v2074_v45 }
0x104f   :  { %v2079_v46 = vpop.xlane.xlu1 %2078 }
0x1050   :  { %v2081_v47 = vmul.f32 0.03125, %v2079_v46  ;;  %v2076_v48 = vpop.xlane.xlu0 %2075 }
0x1051   :  { %v2080_v7 = vmul.f32 0.03125, %v2076_v48 }
0x1052   :  { %v2083_v5 = vadd.f32 1e-05, %v2081_v47 }
0x1053   :  { %v2082_v49 = vadd.f32 1e-05, %v2080_v7 }
0x1054   :  { %2469 = vrsqrt.f32 %v2083_v5 }
0x1055   :  { %2471 = vrsqrt.f32 %v2082_v49 }
0x105e   :  { %v2470_v50 = vpop.eup %2469 }
0x105f   :  { %v2472_v52 = vpop.eup %2471  ;;  %v2087_v53 = vmul.f32 %v2470_v50, %v2071_v40 }
0x1060   :  { %v2086_v54 = vmul.f32 %v2472_v52, %v2070_v41 }
0x1061   :  { %v2096_v56 = vmul.f32 %v2169_v51, %v2087_v53 }
0x1062   :  { %v2095_v57 = vmul.f32 %v2169_v51, %v2086_v54 }
0x1063   :  { %v2105_v58 = vadd.f32 %v2170_v55, %v2096_v56 }
0x1064   :  { %v2104_v59 = vadd.f32 %v2170_v55, %v2095_v57 }
0x1065   :  { %2107 = vst.msk [vmem:[#allocation5 + $0x8] sm:$0xff] %vm72_vm0, %v2105_v58 }
0x1066   :  { %2106 = vst.msk [vmem:[#allocation5] sm:$0xff] %vm72_vm0, %v2104_v59 }
0x1067   :  { %2506 = shalt.err (!%p2503_p12)
}
0x1068   :  { %s2507_s29 = scalar_lea.hbm %s2891_s13, 256 }
0x1069   :  { %p2508_p13 = scmp.ne.s32.totalorder %s2891_s13, %s2507_s29  ;;  %p2511_p0 = scmp.lt.u32.totalorder %s2507_s29, %s2891_s13 }
0x106b   :  { %p2513_p1 = pnand %p2511_p0, %p2508_p13 }
0x106d   :  { %2516 = shalt.err (!%p2513_p1)
}
0x106e   :  { %2119 = dma.vmem_to_hbm [thread:$0]  %s2114_s27, 256, %s2891_s13, [#allocation4], %s2522_s18, %s2522_s18, %s2523_s19  }
0x106f   :  { %2519 = dma.done.wait [#allocation4], 256  }
0x1070   :  { %2520 = vsyncadd [#allocation4], 4294967040 }
0x1071   :  { %2123 = vsyncpa [#allocation3], 1 }
0x1072   :  { %2124 = vsyncpa [#allocation4], 1 }

</bundles_post_ra>
